<compile_context>
chip_gen: v7x
topology: tpu7x:2x2x1
jax: 0.10.0
libtpu: 0.0.40
codegen_flags: <defaults>
</compile_context>

<pallas_src>
import functools

import jax
import jax.numpy as jnp
from jax.experimental import pallas as pl
from jax.experimental.pallas import tpu as pltpu


def _choose_tile(total: int, target: int, align: int) -> int:
    """Largest divisor of `total` that is <= `target`, preferring multiples of
    `align`.  Returns `total` itself when total <= target (full-axis block)."""
    if total <= target:
        return total
    best_unaligned = None
    for t in range(target, 0, -1):
        if total % t:
            continue
        if t % align == 0:
            return t
        if best_unaligned is None:
            best_unaligned = t
    return best_unaligned if best_unaligned is not None else total


def _block_diag_gather(tl: int, k: int, dtype):
    """G[t, j] = 1 iff j // k == t  (shape (tl, tl*k)).

    Built in-kernel from 2-D iotas (no integer division, no HBM traffic)."""
    t_iota = jax.lax.broadcasted_iota(jnp.int32, (tl, tl * k), 0)
    j_iota = jax.lax.broadcasted_iota(jnp.int32, (tl, tl * k), 1)
    g = jnp.logical_and(j_iota >= t_iota * k, j_iota < (t_iota + 1) * k)
    return g.astype(dtype)


def _nearest_upsample_kernel(x_ref, o_ref, *, k: int):
    # out[r, j] = x[r, j // k]   (nearest-neighbour upsample by k)
    x = x_ref[...]                                    # (TR, TL)
    tl = x.shape[-1]
    g = _block_diag_gather(tl, k, x.dtype)            # (TL, TL*k), 0/1
    # Exactly one 1 per column of G, so with HIGHEST precision this matmul is
    # an exact lane-replication of x; the small MXU work hides under the DMAs.
    rep = jnp.dot(x, g, preferred_element_type=jnp.float32,
                  precision=jax.lax.Precision.HIGHEST)
    o_ref[...] = rep.astype(o_ref.dtype)


def _max_unpool_kernel(x_ref, idx_ref, o_ref, *, k: int):
    # out[r, j] = x[r, j//k] if idx[r, j//k] == j (global column) else 0
    # TODO(synk): assumes MaxPool1d-style window-local indices
    # (idx[r, t] in [t*k, (t+1)*k)); arbitrary scatter indices that escape
    # their pooling window are not supported by this tiled formulation.
    x = x_ref[...].astype(jnp.float32)                # (TR, TL)
    idx = idx_ref[...].astype(jnp.float32)            # (TR, TL) exact (< 2^24)
    tr, tl = x.shape
    tn = tl * k
    g = _block_diag_gather(tl, k, jnp.float32)        # (TL, TN)
    dot = functools.partial(jnp.dot, preferred_element_type=jnp.float32,
                            precision=jax.lax.Precision.HIGHEST)
    x_rep = dot(x, g)                                 # x_rep[r, j]   = x[r, j//k]
    idx_rep = dot(idx, g)                             # idx_rep[r, j] = idx[r, j//k]
    # Global output column of every lane in this tile (lane axis of Lout).
    col = pl.program_id(1) * tn + jax.lax.broadcasted_iota(
        jnp.int32, (tr, tn), 1)
    out = jnp.where(idx_rep == col.astype(jnp.float32), x_rep, 0.0)
    o_ref[...] = out.astype(o_ref.dtype)


class Unpool1d:
    """Pallas port of ham_radio.system.utils.cnn.Unpool1d (no parameters)."""

    def __init__(self, pool_size: int):
        self.pool_size = pool_size

    def __call__(self, x, indices=None):
        k = self.pool_size
        if k < 2:
            return x
        N, C, L = x.shape
        Lout = L * k
        rows = N * C
        x2 = x.reshape(rows, L)

        # Tile sizes: lane-dense output tiles (TN = TL*k), sublane-aligned
        # row tiles; tiles divide the arrays exactly so every block is full.
        TR = _choose_tile(rows, 512, 8)
        TL = _choose_tile(L, 128, 128)
        TN = TL * k
        grid = (rows // TR, L // TL)
        cparams = pltpu.CompilerParams(
            dimension_semantics=("parallel", "parallel"))

        if indices is None:
            out2 = pl.pallas_call(
                functools.partial(_nearest_upsample_kernel, k=k),
                out_shape=jax.ShapeDtypeStruct((rows, Lout), x.dtype),
                grid=grid,
                in_specs=[pl.BlockSpec((TR, TL), lambda r, l: (r, l))],
                out_specs=pl.BlockSpec((TR, TN), lambda r, l: (r, l)),
                compiler_params=cparams,
            )(x2)
        else:
            idx2 = indices.reshape(rows, L).astype(jnp.int32)
            out2 = pl.pallas_call(
                functools.partial(_max_unpool_kernel, k=k),
                out_shape=jax.ShapeDtypeStruct((rows, Lout), x.dtype),
                grid=grid,
                in_specs=[
                    pl.BlockSpec((TR, TL), lambda r, l: (r, l)),
                    pl.BlockSpec((TR, TL), lambda r, l: (r, l)),
                ],
                out_specs=pl.BlockSpec((TR, TN), lambda r, l: (r, l)),
                compiler_params=cparams,
            )(x2, idx2)

        return out2.reshape(N, C, Lout)


if __name__ == "__main__":
    key = jax.random.PRNGKey(0)
    N, C, L, K = 2, 4, 16, 2
    kx, ki = jax.random.split(key)
    x = jax.random.normal(kx, (N, C, L), dtype=jnp.float32)

    unpool = Unpool1d(pool_size=K)

    # --- path 1: indices=None (nearest interpolation) ---
    out_interp = unpool(x)
    out_interp = jax.block_until_ready(out_interp)
    ref_interp = jnp.repeat(x, K, axis=-1)
    assert out_interp.shape == (N, C, L * K)
    assert jnp.allclose(out_interp, ref_interp, atol=1e-6), "interpolate mismatch"

    # --- path 2: MaxUnpool1d with valid per-window indices ---
    base = jnp.arange(L, dtype=jnp.int32) * K                        # window starts
    offs = jax.random.randint(ki, (N, C, L), 0, K, dtype=jnp.int32)  # pos in window
    indices = base[None, None, :] + offs                             # global positions
    out_unpool = unpool(x, indices=indices)
    out_unpool = jax.block_until_ready(out_unpool)

    rows = N * C
    ref_unpool = (
        jnp.zeros((rows, L * K), dtype=x.dtype)
        .at[jnp.arange(rows)[:, None], indices.reshape(rows, L)]
        .set(x.reshape(rows, L))
        .reshape(N, C, L * K)
    )
    assert jnp.allclose(out_unpool, ref_unpool, atol=1e-6), "max-unpool mismatch"

    print("KERNEL_OK")
</pallas_src>

<mosaic_0001>
module attributes {stable_mosaic.version = 11 : i64} {
  func.func @_nearest_upsample_kernel(%arg0: i32, %arg1: i32, %arg2: memref<8x16xf32, #tpu.memory_space<vmem>>, %arg3: memref<8x32xf32, #tpu.memory_space<vmem>>) attributes {dimension_semantics = [#tpu.dimension_semantics<parallel>, #tpu.dimension_semantics<parallel>], iteration_bounds = array<i64: 1, 1>, scalar_prefetch = 0 : i64, scratch_operands = 0 : i64, tpu.core_type = #tpu.core_type<tc>, window_params = [{transform_indices = @transform_0, window_bounds = array<i64: 8, 16>}, {transform_indices = @transform_1, window_bounds = array<i64: 8, 32>}]} {
    %c0 = arith.constant 0 : index
    %c0_0 = arith.constant 0 : index
    %0 = vector.load %arg2[%c0, %c0_0] : memref<8x16xf32, #tpu.memory_space<vmem>>, vector<8x16xf32>
    %1 = tpu.iota {dimensions = array<i32: 0>} : vector<16x32xi32>
    %2 = tpu.iota {dimensions = array<i32: 1>} : vector<16x32xi32>
    %c2_i32 = arith.constant 2 : i32
    %3 = vector.broadcast %c2_i32 : i32 to vector<16x32xi32>
    %4 = arith.muli %1, %3 : vector<16x32xi32>
    %5 = arith.cmpi sge, %2, %4 : vector<16x32xi32>
    %c1_i32 = arith.constant 1 : i32
    %6 = vector.broadcast %c1_i32 : i32 to vector<16x32xi32>
    %7 = arith.addi %1, %6 : vector<16x32xi32>
    %c2_i32_1 = arith.constant 2 : i32
    %8 = vector.broadcast %c2_i32_1 : i32 to vector<16x32xi32>
    %9 = arith.muli %7, %8 : vector<16x32xi32>
    %10 = arith.cmpi slt, %2, %9 : vector<16x32xi32>
    %11 = arith.andi %5, %10 : vector<16x32xi1>
    %12 = arith.extui %11 : vector<16x32xi1> to vector<16x32xi32>
    %13 = arith.sitofp %12 : vector<16x32xi32> to vector<16x32xf32>
    %cst = arith.constant dense<0.000000e+00> : vector<8x32xf32>
    %14 = tpu.matmul %0, %13, %cst {dimension_numbers = #tpu.dot_dimension_numbers<[1], [0], [0], [1], [0, 0, 1, 1], [], []>, precision = #tpu.contract_precision<fp32>} : vector<8x16xf32>, vector<16x32xf32>, vector<8x32xf32> -> vector<8x32xf32>
    %c0_2 = arith.constant 0 : index
    %c0_3 = arith.constant 0 : index
    %15 = vector.load %arg3[%c0_2, %c0_3] : memref<8x32xf32, #tpu.memory_space<vmem>>, vector<8x32xf32>
    tpu.vector_store %arg3[%c0_2, %c0_3], %14 {strides = array<i32>} : memref<8x32xf32, #tpu.memory_space<vmem>>, vector<8x32xf32>,
    return
  }
  func.func @transform_0(%arg0: i32, %arg1: i32) -> (i32, i32) {
    %c0_i32 = arith.constant 0 : i32
    return %arg0, %arg1 : i32, i32
  }
  func.func @transform_1(%arg0: i32, %arg1: i32) -> (i32, i32) {
    %c0_i32 = arith.constant 0 : i32
    return %arg0, %arg1 : i32, i32
  }
}

</mosaic_0001>

<bundles_post_ra>
// kernel: tpu_custom_call.1
= control target key start
LH: loop header
LB: loop body
LE: loop exit
PB: predicated region body
PF: predicated region fallthrough
CT: control target
= control target key end

     0   :  { %6 = vsyncpa [#allocation3], 0  ;;  %s734_s0 = inlined_call_operand.hbm [shape: f32[8,16], index: 0, kind: input, shape index: {}]   ;;  %s735_s1 = inlined_call_operand.hbm [shape: f32[8,32], index: 1, kind: output, shape index: {}]  }
   0x1   :  { %7 = vsyncpa [#allocation4], 0  ;;  %s672_s6 = smov [#allocation2]   ;;  %s624_s10 = scalar_lea.hbm %s734_s0, 128 }
   0x2   :  { %s14_s7 = sshll.u32 %s672_s6, 4  ;;  %p625_p0 = scmp.ne.s32.totalorder %s734_s0, %s624_s10  ;;  %s15_s7 = int_to_ptr.vmem [resolvable:$true] %s14_s7 }
   0x3   :  { %p628_p1 = scmp.lt.u32.totalorder %s624_s10, %s734_s0 }
   0x5   :  { %p630_p2 = pnand %p628_p1, %p625_p0 }
   0x7   :  { %633 = shalt.err (!%p630_p2)
}
   0x8   :  { %s634_s15 = scalar_lea.vmem %s15_s7, 128  ;;  %p639_p4 = scmp.lt.s32.totalorder %s15_s7, %s15_s7 }
   0x9   :  { %p635_p3 = scmp.ne.s32.totalorder %s15_s7, %s634_s15  ;;  %p640_p5 = scmp.lt.s32.totalorder %s634_s15, %s634_s15 }
   0xb   :  { %p641_p6 = por %p640_p5, %p639_p4 }
   0xd   :  { %p642_p7 = pnand %p641_p6, %p635_p3 }
   0xf   :  { %645 = shalt.err (!%p642_p7)
}
  0x10   :  { %17 = dma.hbm_to_vmem [thread:$0]  %s734_s0, 128, %s15_s7, [#allocation3]  }
  0x11   :  { %668 = dma.done.wait [#allocation3], 128  }
  0x12   :  { %669 = vsyncadd [#allocation3], 4294967168  ;;  %v22_v0 = vlaneseq  ;;  %v673_v1 = vmov 0.0|0.0   ;;  %vm674_vm0 = vmmov 0   ;;  %v675_v4 = vmov 0.0   ;;  %v21_v12 = vld [vmem:[#allocation2] sm:$0xff] }
  0x13   :  { %600 = vmatprep.subr.bf16.mxu0 %v673_v1  ;;  %591 = vmatprep.subr.bf16.mxu1 %v673_v1  ;;  %vm43_vm1 = vcmask 130048   ;;  %v676_v23 = vmov 1.0|1.0   ;;  %s677_s0 = smov [#allocation5]   ;;  %vm506_vm9 = vcmask 261120  }
  0x14   :  { %v23_v2 = vshrl.u32 %v22_v0, 7  ;;  %v26_v3 = vand.u32 127, %v22_v0  ;;  %574 = vmatprep.mubr.msk.f32.mxu0 %vm674_vm0, %v675_v4  ;;  %553 = vmatprep.mubr.msk.f32.mxu1 %vm674_vm0, %v675_v4  ;;  %v45_v14 = vsel %vm43_vm1, %v21_v12, 0  ;;  %s514_s18 = sshll.u32 %s677_s0, 4  ;;  %s515_s18 = int_to_ptr.vmem [resolvable:$true] %s514_s18 }
  0x15   :  { %v114_v15 = vand.u32 4294901760, %v45_v14  ;;  %s646_s19 = scalar_lea.vmem %s515_s18, 128  ;;  %p651_p9 = scmp.lt.s32.totalorder %s515_s18, %s515_s18 }
  0x16   :  { %v24_v5 = vadd.s32 8, %v23_v2  ;;  %v27_v6 = vmul.u32 2, %v23_v2  ;;  %v31_v7 = vadd.s32 1, %v23_v2  ;;  %p647_p8 = scmp.ne.s32.totalorder %s515_s18, %s646_s19  ;;  %p652_p10 = scmp.lt.s32.totalorder %s646_s19, %s646_s19 }
  0x17   :  { %v115_v18 = vsub.f32 %v45_v14, %v114_v15 }
  0x18   :  { %v28_v8 = vmul.u32 2, %v24_v5  ;;  %vm702_vm2 = vcmp.ge.s32.totalorder %v26_v3, %v27_v6  ;;  %v32_v10 = vadd.s32 1, %v24_v5  ;;  %v33_v11 = vmul.u32 2, %v31_v7  ;;  %p653_p11 = por %p652_p10, %p651_p9 }
  0x19   :  { %v116_v24 = vand.u32 4294901760, %v115_v18 }
  0x1a   :  { %vm30_vm3 = vcmp.ge.s32.totalorder %v26_v3, %v28_v8  ;;  %v34_v13 = vmul.u32 2, %v32_v10  ;;  %vm35_vm4 = vcmp.lt.s32.totalorder %v26_v3, %v33_v11  ;;  %p654_p12 = pnand %p653_p11, %p647_p8 }
  0x1b   :  { %vm37_vm5 = vmand %vm702_vm2, %vm35_vm4  ;;  %v117_v27 = vsub.f32 %v115_v18, %v116_v24 }
  0x1c   :  { %vm36_vm6 = vcmp.lt.s32.totalorder %v26_v3, %v34_v13  ;;  %v523_v16 = vsel %vm37_vm5, 1.0, %v675_v4 }
  0x1d   :  { %vm38_vm7 = vmand %vm30_vm3, %vm36_vm6  ;;  %v126_v17 = vsub.f32 %v523_v16, %v523_v16  ;;  %v118_v30 = vand.u32 4294901760, %v117_v27 }
  0x1e   :  { %v524_v19 = vsel %vm38_vm7, 1.0, %v675_v4  ;;  %vm708_vm8 = vmpackc.low %vm38_vm7, %vm37_vm5 }
  0x1f   :  { %v127_v21 = vand.u32 4294901760, %v126_v17  ;;  %v133_v22 = vsub.f32 %v524_v19, %v524_v19  ;;  %602 = vmatpush3.bf16.msk.msra.mxu0 %vm708_vm8, %v676_v23  ;;  %593 = vmatpush3.bf16.msk.msra.mxu1 %vm708_vm8, %v676_v23 }
  0x20   :  { %603 = vmatprep.subr.bf16.mxu0 %v673_v1  ;;  %594 = vmatprep.subr.bf16.mxu1 %v673_v1 }
  0x21   :  { %v128_v25 = vsub.f32 %v126_v17, %v127_v21  ;;  %v134_v26 = vand.u32 4294901760, %v133_v22  ;;  %v598_v34 = vpack.c.bf16 %v133_v22, %v126_v17 }
  0x22   :  { %575 = vmatmul.mubr.f32.vlgmr.msra.gmra.mrb[0].mxu0 %v116_v24  ;;  %554 = vmatmul.mubr.f32.vlgmr.msra.gmra.mrb[0].mxu1 %v118_v30 }
  0x23   :  { %v129_v28 = vand.u32 4294901760, %v128_v25  ;;  %v135_v29 = vsub.f32 %v133_v22, %v134_v26  ;;  %v604_v31 = vpack.c.bf16 %v134_v26, %v127_v21  ;;  %581 = vmatprep.mubr.msk.f32.mxu0 %vm674_vm0, %v675_v4  ;;  %560 = vmatprep.mubr.msk.f32.mxu1 %vm674_vm0, %v675_v4 }
  0x25   :  { %v136_v32 = vand.u32 4294901760, %v135_v29  ;;  %605 = vmatpush3.bf16.msra.mxu0 %v604_v31 }
  0x26   :  { %606 = vmatprep.subr.bf16.mxu0 %v673_v1 }
  0x27   :  { %v595_v33 = vpack.c.bf16 %v136_v32, %v129_v28 }
  0x29   :  { %596 = vmatpush3.bf16.msra.mxu1 %v595_v33 }
  0x2a   :  { %582 = vmatmul.mubr.f32.vlgmr.msra.gmra.mrb[0].mxu0 %v114_v15  ;;  %597 = vmatprep.subr.bf16.mxu1 %v673_v1 }
  0x2b   :  { %608 = vmatpush3.bf16.msk.msra.mxu0 %vm708_vm8, %v676_v23  ;;  %588 = vmatprep.mubr.msk.f32.mxu0 %vm674_vm0, %v675_v4 }
  0x2c   :  { %561 = vmatmul.mubr.f32.vlgmr.msra.gmra.mrb[0].mxu1 %v114_v15 }
  0x2d   :  { %599 = vmatpush3.bf16.msra.mxu1 %v598_v34  ;;  %567 = vmatprep.mubr.msk.f32.mxu1 %vm674_vm0, %v675_v4 }
  0x32   :  { %589 = vmatmul.mubr.f32.vlgmr.msra.gmra.mrb[0].mxu0 %v114_v15 }
  0x34   :  { %568 = vmatmul.mubr.f32.vlgmr.msra.gmra.mrb[0].mxu1 %v115_v18 }
 0x105   :  { %v502_v35 = vpop.f32.mrb[0].mxu0 }
 0x106   :  { %v590_v36 = vpop.f32.mrb[1].mxu0 }
 0x107   :  { %v277_v37 = vpop.f32.mrb[0].mxu1 }
 0x108   :  { %v609_v38 = vadd.f32 %v502_v35, %v277_v37  ;;  %v569_v39 = vpop.f32.mrb[1].mxu1 }
 0x10a   :  { %507 = vst.msk [vmem:[#allocation5] sm:$0xff] %vm506_vm9, %v609_v38 }
 0x10b   :  { %657 = shalt.err (!%p654_p12)
}
 0x10c   :  { %s658_s22 = scalar_lea.hbm %s735_s1, 128 }
 0x10d   :  { %p659_p13 = scmp.ne.s32.totalorder %s735_s1, %s658_s22  ;;  %p662_p0 = scmp.lt.u32.totalorder %s658_s22, %s735_s1 }
 0x10f   :  { %p664_p1 = pnand %p662_p0, %p659_p13 }
 0x111   :  { %667 = shalt.err (!%p664_p1)
}
 0x112   :  { %517 = dma.vmem_to_hbm [thread:$0]  %s515_s18, 128, %s735_s1, [#allocation4]  }
 0x113   :  { %670 = dma.done.wait [#allocation4], 128  }
 0x114   :  { %671 = vsyncadd [#allocation4], 4294967168 }
 0x115   :  { %521 = vsyncpa [#allocation3], 1 }
 0x116   :  { %522 = vsyncpa [#allocation4], 1 }

</bundles_post_ra>
